<compile_context>
chip_gen: v7x
topology: tpu7x:2x2x1
jax: 0.10.0
libtpu: 0.0.40
codegen_flags: <defaults>
</compile_context>

<pallas_src>
import functools

import jax
import jax.numpy as jnp
from jax import lax
from jax.experimental import pallas as pl
from jax.experimental.pallas import tpu as pltpu

NUM_CLASSES = 20
_LANE = 128


def _round_up(x, m):
    return ((x + m - 1) // m) * m


def _mlp_kernel(x_ref,
                w1_ref, b1_ref,
                w2_ref, b2_ref,
                w3_ref, b3_ref,
                w4_ref, b4_ref,
                o_ref, *, chunk):
    """Runs the 4-layer MLP on one (tile, din) batch block, sub-chunked by rows."""
    n_chunks = x_ref.shape[0] // chunk  # static: tile is a multiple of chunk

    def body(c, carry):
        r0 = pl.multiple_of(c * chunk, 8)  # chunk is a multiple of 16 -> aligned
        # f32 x streamed from HBM by the BlockSpec pipeline; bf16 cast on the VPU.
        xb = x_ref[pl.ds(r0, chunk), :].astype(jnp.bfloat16)
        # Layer 1: Linear(din, 128) + ReLU  (bf16 x bf16 -> f32 accumulate on MXU)
        h = jnp.dot(xb, w1_ref[...], preferred_element_type=jnp.float32)
        h = jnp.maximum(h + b1_ref[...], 0.0).astype(jnp.bfloat16)
        # Layer 2: Linear(128, 64) + ReLU
        h = jnp.dot(h, w2_ref[...], preferred_element_type=jnp.float32)
        h = jnp.maximum(h + b2_ref[...], 0.0).astype(jnp.bfloat16)
        # Layer 3: Linear(64, 32) + ReLU
        h = jnp.dot(h, w3_ref[...], preferred_element_type=jnp.float32)
        h = jnp.maximum(h + b3_ref[...], 0.0).astype(jnp.bfloat16)
        # Layer 4: Linear(32, k) — logits, no activation
        out = jnp.dot(h, w4_ref[...], preferred_element_type=jnp.float32)
        o_ref[pl.ds(r0, chunk), :] = (out + b4_ref[...]).astype(o_ref.dtype)
        return carry

    lax.fori_loop(0, n_chunks, body, 0, unroll=True)


def _vmem_budget_bytes(tile, chunk, din, k):
    """Rough upper bound on kernel VMEM use (lane-padded, double-buffered I/O)."""
    din_p = _round_up(din, _LANE)
    k_p = _round_up(k, _LANE)
    x_bufs = 2 * tile * din_p * 4        # f32 x block, double-buffered
    o_bufs = 2 * tile * k_p * 4          # f32/bf16 out block (count f32, worst case)
    hidden = chunk * _LANE * 4 * 6       # per-chunk intermediates + slack
    weights = 2 << 20                    # resident weights/biases + misc scratch
    return x_bufs + o_bufs + hidden + weights


def _pick_tiles(B, din, k, batch_tile, chunk, vmem_cap):
    """Pick (tile, chunk): chunk multiple of 16, tile multiple of chunk, VMEM-capped."""
    chunk = _round_up(max(16, min(chunk, _round_up(B, 16))), 16)
    tile = _round_up(max(chunk, min(batch_tile, _round_up(B, chunk))), chunk)
    # Shrink the DMA tile (never the chunk) until the VMEM budget fits.
    while tile > chunk and _vmem_budget_bytes(tile, chunk, din, k) > vmem_cap:
        tile = _round_up(max(chunk, tile // 2), chunk)
    return tile, chunk


def mlp_forward(x, params, *, batch_tile=8192, chunk=512, out_dtype=jnp.float32):
    """4-layer MLP forward pass as a single Pallas kernel.

    x: (B, din) float32 (kept f32 end-to-end in HBM; bf16 cast happens in-kernel).
    params: dict w1,b1,...,w4,b4 with weights as (in, out) and biases (1, out).
    Returns (B, k) logits in `out_dtype` (default float32).
    """
    B, din = x.shape
    k = params["w4"].shape[1]

    # Conservative cap: leaves headroom within v7x's 64 MiB physical VMEM.
    vmem_cap = 40 << 20
    tile, chunk = _pick_tiles(B, din, k, batch_tile, chunk, vmem_cap)
    n_tiles = pl.cdiv(B, tile)
    budget = _vmem_budget_bytes(tile, chunk, din, k)
    vmem_limit = int(min(max(budget + (4 << 20), 32 << 20), 48 << 20))

    # Weights/biases are tiny: single full-array blocks with constant index_maps,
    # resident in VMEM across all grid steps (fetched once).
    def full_spec(arr):
        return pl.BlockSpec(arr.shape, lambda i: (0, 0))

    in_specs = [pl.BlockSpec((tile, din), lambda i: (i, 0))]
    args = [x]  # f32 x straight into the kernel: no standalone cast/pad HBM round trip
    for idx in range(1, 5):
        w = params[f"w{idx}"].astype(jnp.bfloat16)  # tiny; halves weight HBM read
        b = params[f"b{idx}"].astype(jnp.float32)   # f32 epilogue (v5e has no bf16 VPU)
        in_specs += [full_spec(w), full_spec(b)]
        args += [w, b]

    kernel = functools.partial(_mlp_kernel, chunk=chunk)
    return pl.pallas_call(
        kernel,
        out_shape=jax.ShapeDtypeStruct((B, k), out_dtype),
        grid_spec=pltpu.PrefetchScalarGridSpec(
            num_scalar_prefetch=0,
            grid=(n_tiles,),
            in_specs=in_specs,
            out_specs=pl.BlockSpec((tile, k), lambda i: (i, 0)),
        ),
        compiler_params=pltpu.CompilerParams(
            dimension_semantics=("parallel",),   # v7x: shard batch tiles over 2 TCs
            vmem_limit_bytes=vmem_limit,
        ),
    )(*args)


def init_mlp_params(din, k=NUM_CLASSES, seed=0):
    """Deterministic init mimicking nn.Linear's U(-1/sqrt(fan_in), 1/sqrt(fan_in))."""
    sizes = [(din, 128), (128, 64), (64, 32), (32, k)]
    key = jax.random.PRNGKey(seed)
    params = {}
    for idx, (fan_in, fan_out) in enumerate(sizes, start=1):
        key, kw, kb = jax.random.split(key, 3)
        bound = 1.0 / jnp.sqrt(jnp.float32(fan_in))
        params[f"w{idx}"] = jax.random.uniform(
            kw, (fan_in, fan_out), jnp.float32, -bound, bound)
        params[f"b{idx}"] = jax.random.uniform(
            kb, (1, fan_out), jnp.float32, -bound, bound)
    return params


def mlp_reference(x, params):
    """Pure-JAX reference mirroring the kernel's bf16-matmul / f32-accumulate math."""
    h = x.astype(jnp.bfloat16)
    for idx in range(1, 4):
        w = params[f"w{idx}"].astype(jnp.bfloat16)
        h = jnp.dot(h, w, preferred_element_type=jnp.float32) + params[f"b{idx}"]
        h = jnp.maximum(h, 0.0).astype(jnp.bfloat16)
    w4 = params["w4"].astype(jnp.bfloat16)
    return jnp.dot(h, w4, preferred_element_type=jnp.float32) + params["b4"]


if __name__ == "__main__":
    din = 32
    batch = 64   # small demo batch; tile picker collapses to a single 64-row tile
    k = NUM_CLASSES

    key = jax.random.PRNGKey(0)
    x = jax.random.normal(key, (batch, din), dtype=jnp.float32)
    params = init_mlp_params(din, k, seed=0)

    out = mlp_forward(x, params)
    out = jax.block_until_ready(out)

    ref = mlp_reference(x, params)
    assert out.shape == (batch, k)
    assert jnp.allclose(out, ref, atol=2e-2, rtol=2e-2), "mismatch vs JAX reference"

    print("KERNEL_OK")
</pallas_src>

<mosaic_0001>
module attributes {stable_mosaic.version = 11 : i64} {
  func.func @_mlp_kernel(%arg0: i32, %arg1: memref<64x32xf32, #tpu.memory_space<vmem>>, %arg2: memref<32x128xbf16, #tpu.memory_space<vmem>>, %arg3: memref<1x128xf32, #tpu.memory_space<vmem>>, %arg4: memref<128x64xbf16, #tpu.memory_space<vmem>>, %arg5: memref<1x64xf32, #tpu.memory_space<vmem>>, %arg6: memref<64x32xbf16, #tpu.memory_space<vmem>>, %arg7: memref<1x32xf32, #tpu.memory_space<vmem>>, %arg8: memref<32x20xbf16, #tpu.memory_space<vmem>>, %arg9: memref<1x20xf32, #tpu.memory_space<vmem>>, %arg10: memref<64x20xf32, #tpu.memory_space<vmem>>) attributes {dimension_semantics = [#tpu.dimension_semantics<parallel>], iteration_bounds = array<i64: 1>, scalar_prefetch = 0 : i64, scratch_operands = 0 : i64, tpu.core_type = #tpu.core_type<tc>, window_params = [{transform_indices = @transform_0, window_bounds = array<i64: 64, 32>}, {pipeline_mode = #tpu.pipeline_mode<synchronous>, transform_indices = @transform_1, window_bounds = array<i64: 32, 128>}, {pipeline_mode = #tpu.pipeline_mode<synchronous>, transform_indices = @transform_2, window_bounds = array<i64: 1, 128>}, {pipeline_mode = #tpu.pipeline_mode<synchronous>, transform_indices = @transform_3, window_bounds = array<i64: 128, 64>}, {pipeline_mode = #tpu.pipeline_mode<synchronous>, transform_indices = @transform_4, window_bounds = array<i64: 1, 64>}, {pipeline_mode = #tpu.pipeline_mode<synchronous>, transform_indices = @transform_5, window_bounds = array<i64: 64, 32>}, {pipeline_mode = #tpu.pipeline_mode<synchronous>, transform_indices = @transform_6, window_bounds = array<i64: 1, 32>}, {pipeline_mode = #tpu.pipeline_mode<synchronous>, transform_indices = @transform_7, window_bounds = array<i64: 32, 20>}, {pipeline_mode = #tpu.pipeline_mode<synchronous>, transform_indices = @transform_8, window_bounds = array<i64: 1, 20>}, {transform_indices = @transform_9, window_bounds = array<i64: 64, 20>}]} {
    %c0_i32 = arith.constant 0 : i32
    %c64_i32 = arith.constant 64 : i32
    %0 = arith.muli %c0_i32, %c64_i32 : i32
    %1 = tpu.assume_multiple %0, 8 : i32
    %2 = arith.index_cast %1 : i32 to index
    %c0 = arith.constant 0 : index
    %3 = vector.load %arg1[%2, %c0] : memref<64x32xf32, #tpu.memory_space<vmem>>, vector<64x32xf32>
    %4 = arith.truncf %3 : vector<64x32xf32> to vector<64x32xbf16>
    %c0_0 = arith.constant 0 : index
    %c0_1 = arith.constant 0 : index
    %5 = vector.load %arg2[%c0_0, %c0_1] : memref<32x128xbf16, #tpu.memory_space<vmem>>, vector<32x128xbf16>
    %cst = arith.constant dense<0.000000e+00> : vector<64x128xf32>
    %6 = tpu.matmul %4, %5, %cst {dimension_numbers = #tpu.dot_dimension_numbers<[1], [0], [0], [1], [0, 0, 1, 1], [], []>} : vector<64x32xbf16>, vector<32x128xbf16>, vector<64x128xf32> -> vector<64x128xf32>
    %c0_2 = arith.constant 0 : index
    %c0_3 = arith.constant 0 : index
    %7 = vector.load %arg3[%c0_2, %c0_3] : memref<1x128xf32, #tpu.memory_space<vmem>>, vector<1x128xf32>
    %8 = vector.broadcast %7 : vector<1x128xf32> to vector<64x128xf32>
    %9 = arith.addf %6, %8 : vector<64x128xf32>
    %cst_4 = arith.constant 0.000000e+00 : f32
    %10 = vector.broadcast %cst_4 : f32 to vector<64x128xf32>
    %11 = arith.maximumf %9, %10 : vector<64x128xf32>
    %12 = arith.truncf %11 : vector<64x128xf32> to vector<64x128xbf16>
    %c0_5 = arith.constant 0 : index
    %c0_6 = arith.constant 0 : index
    %13 = vector.load %arg4[%c0_5, %c0_6] : memref<128x64xbf16, #tpu.memory_space<vmem>>, vector<128x64xbf16>
    %cst_7 = arith.constant dense<0.000000e+00> : vector<64x64xf32>
    %14 = tpu.matmul %12, %13, %cst_7 {dimension_numbers = #tpu.dot_dimension_numbers<[1], [0], [0], [1], [0, 0, 1, 1], [], []>} : vector<64x128xbf16>, vector<128x64xbf16>, vector<64x64xf32> -> vector<64x64xf32>
    %c0_8 = arith.constant 0 : index
    %c0_9 = arith.constant 0 : index
    %15 = vector.load %arg5[%c0_8, %c0_9] : memref<1x64xf32, #tpu.memory_space<vmem>>, vector<1x64xf32>
    %16 = vector.broadcast %15 : vector<1x64xf32> to vector<64x64xf32>
    %17 = arith.addf %14, %16 : vector<64x64xf32>
    %cst_10 = arith.constant 0.000000e+00 : f32
    %18 = vector.broadcast %cst_10 : f32 to vector<64x64xf32>
    %19 = arith.maximumf %17, %18 : vector<64x64xf32>
    %20 = arith.truncf %19 : vector<64x64xf32> to vector<64x64xbf16>
    %c0_11 = arith.constant 0 : index
    %c0_12 = arith.constant 0 : index
    %21 = vector.load %arg6[%c0_11, %c0_12] : memref<64x32xbf16, #tpu.memory_space<vmem>>, vector<64x32xbf16>
    %cst_13 = arith.constant dense<0.000000e+00> : vector<64x32xf32>
    %22 = tpu.matmul %20, %21, %cst_13 {dimension_numbers = #tpu.dot_dimension_numbers<[1], [0], [0], [1], [0, 0, 1, 1], [], []>} : vector<64x64xbf16>, vector<64x32xbf16>, vector<64x32xf32> -> vector<64x32xf32>
    %c0_14 = arith.constant 0 : index
    %c0_15 = arith.constant 0 : index
    %23 = vector.load %arg7[%c0_14, %c0_15] : memref<1x32xf32, #tpu.memory_space<vmem>>, vector<1x32xf32>
    %24 = vector.broadcast %23 : vector<1x32xf32> to vector<64x32xf32>
    %25 = arith.addf %22, %24 : vector<64x32xf32>
    %cst_16 = arith.constant 0.000000e+00 : f32
    %26 = vector.broadcast %cst_16 : f32 to vector<64x32xf32>
    %27 = arith.maximumf %25, %26 : vector<64x32xf32>
    %28 = arith.truncf %27 : vector<64x32xf32> to vector<64x32xbf16>
    %c0_17 = arith.constant 0 : index
    %c0_18 = arith.constant 0 : index
    %29 = vector.load %arg8[%c0_17, %c0_18] : memref<32x20xbf16, #tpu.memory_space<vmem>>, vector<32x20xbf16>
    %cst_19 = arith.constant dense<0.000000e+00> : vector<64x20xf32>
    %30 = tpu.matmul %28, %29, %cst_19 {dimension_numbers = #tpu.dot_dimension_numbers<[1], [0], [0], [1], [0, 0, 1, 1], [], []>} : vector<64x32xbf16>, vector<32x20xbf16>, vector<64x20xf32> -> vector<64x20xf32>
    %c0_20 = arith.constant 0 : index
    %c0_21 = arith.constant 0 : index
    %31 = vector.load %arg9[%c0_20, %c0_21] : memref<1x20xf32, #tpu.memory_space<vmem>>, vector<1x20xf32>
    %32 = vector.broadcast %31 : vector<1x20xf32> to vector<64x20xf32>
    %33 = arith.addf %30, %32 : vector<64x20xf32>
    %34 = arith.index_cast %1 : i32 to index
    %c0_22 = arith.constant 0 : index
    %35 = vector.load %arg10[%34, %c0_22] : memref<64x20xf32, #tpu.memory_space<vmem>>, vector<64x20xf32>
    tpu.vector_store %arg10[%34, %c0_22], %33 {strides = array<i32>} : memref<64x20xf32, #tpu.memory_space<vmem>>, vector<64x20xf32>,
    %c1_i32 = arith.constant 1 : i32
    return
  }
  func.func @transform_0(%arg0: i32) -> (i32, i32) {
    %c0_i32 = arith.constant 0 : i32
    %c0_i32_0 = arith.constant 0 : i32
    return %arg0, %c0_i32 : i32, i32
  }
  func.func @transform_1(%arg0: i32) -> (i32, i32) {
    %c0_i32 = arith.constant 0 : i32
    %c0_i32_0 = arith.constant 0 : i32
    %c0_i32_1 = arith.constant 0 : i32
    return %c0_i32, %c0_i32_0 : i32, i32
  }
  func.func @transform_2(%arg0: i32) -> (i32, i32) {
    %c0_i32 = arith.constant 0 : i32
    %c0_i32_0 = arith.constant 0 : i32
    %c0_i32_1 = arith.constant 0 : i32
    return %c0_i32, %c0_i32_0 : i32, i32
  }
  func.func @transform_3(%arg0: i32) -> (i32, i32) {
    %c0_i32 = arith.constant 0 : i32
    %c0_i32_0 = arith.constant 0 : i32
    %c0_i32_1 = arith.constant 0 : i32
    return %c0_i32, %c0_i32_0 : i32, i32
  }
  func.func @transform_4(%arg0: i32) -> (i32, i32) {
    %c0_i32 = arith.constant 0 : i32
    %c0_i32_0 = arith.constant 0 : i32
    %c0_i32_1 = arith.constant 0 : i32
    return %c0_i32, %c0_i32_0 : i32, i32
  }
  func.func @transform_5(%arg0: i32) -> (i32, i32) {
    %c0_i32 = arith.constant 0 : i32
    %c0_i32_0 = arith.constant 0 : i32
    %c0_i32_1 = arith.constant 0 : i32
    return %c0_i32, %c0_i32_0 : i32, i32
  }
  func.func @transform_6(%arg0: i32) -> (i32, i32) {
    %c0_i32 = arith.constant 0 : i32
    %c0_i32_0 = arith.constant 0 : i32
    %c0_i32_1 = arith.constant 0 : i32
    return %c0_i32, %c0_i32_0 : i32, i32
  }
  func.func @transform_7(%arg0: i32) -> (i32, i32) {
    %c0_i32 = arith.constant 0 : i32
    %c0_i32_0 = arith.constant 0 : i32
    %c0_i32_1 = arith.constant 0 : i32
    return %c0_i32, %c0_i32_0 : i32, i32
  }
  func.func @transform_8(%arg0: i32) -> (i32, i32) {
    %c0_i32 = arith.constant 0 : i32
    %c0_i32_0 = arith.constant 0 : i32
    %c0_i32_1 = arith.constant 0 : i32
    return %c0_i32, %c0_i32_0 : i32, i32
  }
  func.func @transform_9(%arg0: i32) -> (i32, i32) {
    %c0_i32 = arith.constant 0 : i32
    %c0_i32_0 = arith.constant 0 : i32
    return %arg0, %c0_i32 : i32, i32
  }
}

</mosaic_0001>

<bundles_post_ra>
// kernel: tpu_custom_call.1
= control target key start
LH: loop header
LB: loop body
LE: loop exit
PB: predicated region body
PF: predicated region fallthrough
CT: control target
= control target key end

     0   :  { %vm68_vm0 = vcmask 261120   ;;  %vm345_vm1 = vcmask 523264   ;;  %vm535_vm2 = vcmask 162816   ;;  %s870_s1 = inlined_call_operand.vmem [shape: bf16[32,128], index: 1, kind: input, shape index: {}]   ;;  %s871_s0 = inlined_call_operand.vmem [shape: f32[64,32], index: 0, kind: input, shape index: {}]   ;;  %s872_s3 = inlined_call_operand.vmem [shape: bf16[128,64], index: 3, kind: input, shape index: {}]   ;;  %s873_s5 = inlined_call_operand.vmem [shape: bf16[64,32], index: 5, kind: input, shape index: {}]   ;;  %s874_s2 = inlined_call_operand.vmem [shape: f32[1,128], index: 2, kind: input, shape index: {}]   ;;  %s875_s7 = inlined_call_operand.vmem [shape: bf16[32,20], index: 7, kind: input, shape index: {}]   ;;  %s876_s4 = inlined_call_operand.vmem [shape: f32[1,64], index: 4, kind: input, shape index: {}]   ;;  %s877_s6 = inlined_call_operand.vmem [shape: f32[1,32], index: 6, kind: input, shape index: {}]   ;;  %s878_s8 = inlined_call_operand.vmem [shape: f32[1,20], index: 8, kind: input, shape index: {}]   ;;  %s879_s9 = inlined_call_operand.vmem [shape: f32[64,20], index: 9, kind: output, shape index: {}]  }
   0x1   :  { %v676_v0 = vld [vmem:[%s870_s1] sm:$0xff]   ;;  %v677_v1 = vld [vmem:[%s870_s1 + $0x8] sm:$0xff]   ;;  %v35_v5 = vld [vmem:[%s871_s0 + $0x10] sm:$0xff] }
   0x2   :  { %612 = vmatprep.subr.bf16.mxu0 %v676_v0  ;;  %v33_v2 = vld [vmem:[%s871_s0] sm:$0xff]  ;;  %v34_v3 = vld [vmem:[%s871_s0 + $0x8] sm:$0xff]  ;;  %v36_v6 = vld [vmem:[%s871_s0 + $0x18] sm:$0xff] }
   0x3   :  { %613 = vmatpush3.bf16.msra.mxu0 %v676_v0  ;;  %v41_v4 = vpack.c.bf16 %v34_v3, %v33_v2  ;;  %v37_v7 = vld [vmem:[%s871_s0 + $0x20] sm:$0xff]  ;;  %v38_v8 = vld [vmem:[%s871_s0 + $0x28] sm:$0xff]  ;;  %v42_v10 = vpack.c.bf16 %v36_v6, %v35_v5  ;;  %v39_v13 = vld [vmem:[%s871_s0 + $0x30] sm:$0xff] }
   0x4   :  { %614 = vmatprep.subr.bf16.mxu0 %v677_v1  ;;  %v678_v9 = vld [vmem:[%s872_s3] sm:$0xff]   ;;  %v679_v11 = vld [vmem:[%s872_s3 + $0x8] sm:$0xff]   ;;  %v43_v12 = vpack.c.bf16 %v38_v8, %v37_v7  ;;  %v680_v14 = vld [vmem:[%s872_s3 + $0x10] sm:$0xff]  }
   0x5   :  { %616 = vmatprep.mubr.msk.bf16.mxu0 %vm68_vm0, %v41_v4  ;;  %624 = vmatprep.subr.bf16.mxu1 %v678_v9  ;;  %v40_v15 = vld [vmem:[%s871_s0 + $0x38] sm:$0xff]  ;;  %v682_v18 = vld [vmem:[%s872_s3 + $0x20] sm:$0xff]   ;;  %v683_v19 = vld [vmem:[%s872_s3 + $0x28] sm:$0xff]  }
   0x6   :  { %625 = vmatpush3.bf16.msra.mxu1 %v678_v9  ;;  %v681_v16 = vld [vmem:[%s872_s3 + $0x18] sm:$0xff]   ;;  %v44_v17 = vpack.c.bf16 %v40_v15, %v39_v13  ;;  %v684_v20 = vld [vmem:[%s872_s3 + $0x30] sm:$0xff]   ;;  %v686_v22 = vld [vmem:[%s873_s5] sm:$0xff]  }
   0x7   :  { %615 = vmatpush3.bf16.msra.mxu0 %v677_v1  ;;  %626 = vmatprep.subr.bf16.mxu1 %v679_v11  ;;  %v685_v21 = vld [vmem:[%s872_s3 + $0x38] sm:$0xff]   ;;  %v687_v23 = vld [vmem:[%s873_s5 + $0x8] sm:$0xff]   ;;  %v548_v24 = vld [vmem:[%s874_s2] ss:$0 sm:$0xff] }
   0x8   :  { %648 = vmatprep.subr.bf16.mxu0 %v686_v22  ;;  %v688_v53 = vld [vmem:[%s873_s5 + $0x10] sm:$0xff]   ;;  %v689_v54 = vld [vmem:[%s873_s5 + $0x18] sm:$0xff]   ;;  %v690_v55 = vld [vmem:[%s875_s7] sm:$0xff]  }
   0x9   :  { %v555_v56 = vld [vmem:[%s876_s4] ss:$0 sm:$0xff] }
   0xa   :  { %617 = vmatmul.mubr.msk.bf16.vlgmr.msra.gmra.mrb[0].mxu0 %vm68_vm0, %v42_v10  ;;  %627 = vmatpush3.bf16.msra.mxu1 %v679_v11 }
   0xb   :  { %620 = vmatprep.mubr.msk.bf16.mxu0 %vm68_vm0, %v43_v12  ;;  %628 = vmatprep.subr.bf16.mxu1 %v680_v14 }
   0xc   :  { %649 = vmatpush3.bf16.msra.mxu0 %v686_v22  ;;  %v564_v22 = vld [vmem:[%s877_s6] ss:$0 sm:$0xff] }
   0xd   :  { %650 = vmatprep.subr.bf16.mxu0 %v687_v23 }
   0xe   :  { %629 = vmatpush3.bf16.msra.mxu1 %v680_v14 }
   0xf   :  { %630 = vmatprep.subr.bf16.mxu1 %v681_v16 }
  0x10   :  { %651 = vmatpush3.bf16.msra.mxu0 %v687_v23 }
  0x11   :  { %652 = vmatprep.subr.bf16.mxu0 %v688_v53 }
  0x12   :  { %621 = vmatmul.mubr.msk.bf16.gmra.mrb[4].mxu0 %vm68_vm0, %v44_v17  ;;  %631 = vmatpush3.bf16.msra.mxu1 %v681_v16 }
  0x13   :  { %632 = vmatprep.subr.bf16.mxu1 %v682_v18 }
  0x14   :  { %653 = vmatpush3.bf16.msra.mxu0 %v688_v53 }
  0x15   :  { %654 = vmatprep.subr.bf16.mxu0 %v689_v54 }
  0x16   :  { %633 = vmatpush3.bf16.msra.mxu1 %v682_v18 }
  0x17   :  { %634 = vmatprep.subr.bf16.mxu1 %v683_v19 }
  0x18   :  { %655 = vmatpush3.bf16.msra.mxu0 %v689_v54 }
  0x19   :  { %664 = vmatprep.subr.bf16.mxu0 %v690_v55 }
  0x1a   :  { %635 = vmatpush3.bf16.msra.mxu1 %v683_v19 }
  0x1b   :  { %636 = vmatprep.subr.bf16.mxu1 %v684_v20 }
  0x1e   :  { %637 = vmatpush3.bf16.msra.mxu1 %v684_v20 }
  0x1f   :  { %638 = vmatprep.subr.bf16.mxu1 %v685_v21 }
  0x22   :  { %639 = vmatpush3.bf16.msra.mxu1 %v685_v21  ;;  %v691_v21 = vld [vmem:[%s875_s7 + $0x8] sm:$0xff]  }
  0xdd   :  { %v618_v25 = vpop.f32.mrb[0].mxu0 }
  0xde   :  { %v124_v26 = vadd.f32 %v618_v25, %v548_v24  ;;  %v115_v27 = vpop.f32.mrb[1].mxu0 }
  0xdf   :  { %v116_v28 = vadd.f32 %v548_v24, %v115_v27  ;;  %v619_v29 = vpop.f32.mrb[2].mxu0 }
  0xe0   :  { %v127_v30 = vadd.f32 %v619_v29, %v548_v24  ;;  %v118_v31 = vpop.f32.mrb[3].mxu0  ;;  %v148_v33 = vmax.f32 %v124_v26, 0.0 }
  0xe1   :  { %v119_v32 = vadd.f32 %v548_v24, %v118_v31  ;;  %v146_v35 = vmax.f32 %v116_v28, 0.0 }
  0xe2   :  { %v149_v34 = vmax.f32 %v127_v30, 0.0 }
  0xe3   :  { %v147_v36 = vmax.f32 %v119_v32, 0.0 }
  0xe4   :  { %v155_v37 = vpack.c.bf16 %v149_v34, %v148_v33 }
  0xe5   :  { %v622_v38 = vpop.f32.mrb[4].mxu0  ;;  %v154_v39 = vpack.c.bf16 %v147_v36, %v146_v35 }
  0xe6   :  { %v140_v40 = vadd.f32 %v622_v38, %v548_v24  ;;  %v131_v41 = vpop.f32.mrb[5].mxu0 }
  0xe7   :  { %v132_v42 = vadd.f32 %v548_v24, %v131_v41  ;;  %v623_v43 = vpop.f32.mrb[6].mxu0  ;;  %640 = vmatprep.mubr.bf16.mxu1 %v154_v39 }
  0xe8   :  { %v143_v44 = vadd.f32 %v623_v43, %v548_v24  ;;  %v134_v45 = vpop.f32.mrb[7].mxu0  ;;  %641 = vmatmul.mubr.bf16.vlgmr.msra.gmra.mrb[0].mxu1 %v155_v37  ;;  %v152_v47 = vmax.f32 %v140_v40, 0.0 }
  0xe9   :  { %v135_v46 = vadd.f32 %v548_v24, %v134_v45  ;;  %v150_v49 = vmax.f32 %v132_v42, 0.0 }
  0xea   :  { %v153_v48 = vmax.f32 %v143_v44, 0.0 }
  0xeb   :  { %v151_v50 = vmax.f32 %v135_v46, 0.0 }
  0xec   :  { %v157_v51 = vpack.c.bf16 %v153_v48, %v152_v47 }
  0xed   :  { %v156_v52 = vpack.c.bf16 %v151_v50, %v150_v49 }
  0xef   :  { %644 = vmatprep.mubr.bf16.mxu1 %v156_v52 }
  0xf0   :  { %645 = vmatmul.mubr.bf16.gmra.mrb[4].mxu1 %v157_v51  ;;  %v573_v51 = vld [vmem:[%s878_s8] ss:$0 sm:$0xff] }
 0x1bb   :  { %v642_v57 = vpop.f32.mrb[0].mxu1 }
 0x1bc   :  { %v272_v58 = vadd.f32 %v642_v57, %v555_v56  ;;  %v263_v59 = vpop.f32.mrb[1].mxu1 }
 0x1bd   :  { %v264_v60 = vadd.f32 %v555_v56, %v263_v59  ;;  %v643_v61 = vpop.f32.mrb[2].mxu1 }
 0x1be   :  { %v275_v62 = vadd.f32 %v643_v61, %v555_v56  ;;  %v266_v63 = vpop.f32.mrb[3].mxu1  ;;  %v296_v1 = vmax.f32 %v272_v58, 0.0 }
 0x1bf   :  { %v267_v0 = vadd.f32 %v555_v56, %v266_v63  ;;  %v294_v3 = vmax.f32 %v264_v60, 0.0 }
 0x1c0   :  { %v297_v2 = vmax.f32 %v275_v62, 0.0 }
 0x1c1   :  { %v295_v4 = vmax.f32 %v267_v0, 0.0 }
 0x1c2   :  { %v303_v5 = vpack.c.bf16 %v297_v2, %v296_v1 }
 0x1c3   :  { %v302_v6 = vpack.c.bf16 %v295_v4, %v294_v3  ;;  %v646_v7 = vpop.f32.mrb[4].mxu1 }
 0x1c4   :  { %v288_v8 = vadd.f32 %v646_v7, %v555_v56  ;;  %v279_v9 = vpop.f32.mrb[5].mxu1 }
 0x1c5   :  { %v280_v10 = vadd.f32 %v555_v56, %v279_v9  ;;  %v647_v11 = vpop.f32.mrb[6].mxu1  ;;  %656 = vmatprep.mubr.msk.bf16.mxu0 %vm345_vm1, %v302_v6 }
 0x1c6   :  { %v291_v12 = vadd.f32 %v647_v11, %v555_v56  ;;  %v282_v13 = vpop.f32.mrb[7].mxu1  ;;  %657 = vmatmul.mubr.msk.bf16.vlgmr.msra.gmra.mrb[8].mxu0 %vm345_vm1, %v303_v5  ;;  %v300_v15 = vmax.f32 %v288_v8, 0.0 }
 0x1c7   :  { %v283_v14 = vadd.f32 %v555_v56, %v282_v13  ;;  %665 = vmatpush3.bf16.msra.mxu0 %v690_v55  ;;  %v298_v17 = vmax.f32 %v280_v10, 0.0 }
 0x1c8   :  { %v301_v16 = vmax.f32 %v291_v12, 0.0  ;;  %666 = vmatprep.subr.bf16.mxu0 %v691_v21 }
 0x1c9   :  { %v299_v18 = vmax.f32 %v283_v14, 0.0 }
 0x1ca   :  { %v305_v19 = vpack.c.bf16 %v301_v16, %v300_v15 }
 0x1cb   :  { %v304_v20 = vpack.c.bf16 %v299_v18, %v298_v17  ;;  %667 = vmatpush3.bf16.msra.mxu0 %v691_v21 }
 0x1cd   :  { %660 = vmatprep.mubr.msk.bf16.mxu0 %vm345_vm1, %v304_v20 }
 0x1ce   :  { %661 = vmatmul.mubr.msk.bf16.gmra.mrb[12].mxu0 %vm345_vm1, %v305_v19 }
 0x299   :  { %v658_v23 = vpop.f32.mrb[8].mxu0 }
 0x29a   :  { %v401_v24 = vadd.f32 %v658_v23, %v564_v22  ;;  %v392_v25 = vpop.f32.mrb[9].mxu0 }
 0x29b   :  { %v393_v26 = vadd.f32 %v564_v22, %v392_v25  ;;  %v659_v27 = vpop.f32.mrb[10].mxu0 }
 0x29c   :  { %v404_v28 = vadd.f32 %v659_v27, %v564_v22  ;;  %v395_v29 = vpop.f32.mrb[11].mxu0  ;;  %v425_v31 = vmax.f32 %v401_v24, 0.0 }
 0x29d   :  { %v396_v30 = vadd.f32 %v564_v22, %v395_v29  ;;  %v423_v33 = vmax.f32 %v393_v26, 0.0 }
 0x29e   :  { %v426_v32 = vmax.f32 %v404_v28, 0.0 }
 0x29f   :  { %v424_v34 = vmax.f32 %v396_v30, 0.0 }
 0x2a0   :  { %v432_v35 = vpack.c.bf16 %v426_v32, %v425_v31 }
 0x2a1   :  { %v431_v36 = vpack.c.bf16 %v424_v34, %v423_v33  ;;  %v662_v37 = vpop.f32.mrb[12].mxu0 }
 0x2a2   :  { %v417_v38 = vadd.f32 %v662_v37, %v564_v22  ;;  %v408_v39 = vpop.f32.mrb[13].mxu0 }
 0x2a3   :  { %v409_v40 = vadd.f32 %v564_v22, %v408_v39  ;;  %v663_v41 = vpop.f32.mrb[14].mxu0  ;;  %668 = vmatprep.mubr.msk.bf16.mxu0 %vm68_vm0, %v431_v36 }
 0x2a4   :  { %v420_v42 = vadd.f32 %v663_v41, %v564_v22  ;;  %v411_v43 = vpop.f32.mrb[15].mxu0  ;;  %669 = vmatmul.mubr.msk.bf16.vlgmr.msra.gmra.mrb[16].mxu0 %vm68_vm0, %v432_v35  ;;  %v429_v45 = vmax.f32 %v417_v38, 0.0 }
 0x2a5   :  { %v412_v44 = vadd.f32 %v564_v22, %v411_v43  ;;  %v427_v47 = vmax.f32 %v409_v40, 0.0 }
 0x2a6   :  { %v430_v46 = vmax.f32 %v420_v42, 0.0 }
 0x2a7   :  { %v428_v48 = vmax.f32 %v412_v44, 0.0 }
 0x2a8   :  { %v434_v49 = vpack.c.bf16 %v430_v46, %v429_v45 }
 0x2a9   :  { %v433_v50 = vpack.c.bf16 %v428_v48, %v427_v47 }
 0x2ab   :  { %672 = vmatprep.mubr.msk.bf16.mxu0 %vm68_vm0, %v433_v50 }
 0x2ac   :  { %673 = vmatmul.mubr.msk.bf16.gmra.mrb[20].mxu0 %vm68_vm0, %v434_v49 }
 0x377   :  { %v670_v52 = vpop.f32.mrb[16].mxu0 }
 0x378   :  { %v513_v53 = vadd.f32 %v670_v52, %v573_v51  ;;  %v504_v54 = vpop.f32.mrb[17].mxu0 }
 0x379   :  { %v505_v55 = vadd.f32 %v573_v51, %v504_v54  ;;  %v671_v56 = vpop.f32.mrb[18].mxu0 }
 0x37a   :  { %538 = vst.msk [vmem:[%s879_s9 + $0x10] sm:$0xff] %vm535_vm2, %v513_v53  ;;  %v516_v57 = vadd.f32 %v671_v56, %v573_v51  ;;  %v507_v58 = vpop.f32.mrb[19].mxu0 }
 0x37b   :  { %536 = vst.msk [vmem:[%s879_s9] sm:$0xff] %vm535_vm2, %v505_v55  ;;  %v508_v59 = vadd.f32 %v573_v51, %v507_v58 }
 0x37c   :  { %539 = vst.msk [vmem:[%s879_s9 + $0x18] sm:$0xff] %vm535_vm2, %v516_v57 }
 0x37d   :  { %537 = vst.msk [vmem:[%s879_s9 + $0x8] sm:$0xff] %vm535_vm2, %v508_v59 }
 0x37f   :  { %v674_v60 = vpop.f32.mrb[20].mxu0 }
 0x380   :  { %v529_v61 = vadd.f32 %v674_v60, %v573_v51  ;;  %v520_v62 = vpop.f32.mrb[21].mxu0 }
 0x381   :  { %v521_v63 = vadd.f32 %v573_v51, %v520_v62  ;;  %v675_v0 = vpop.f32.mrb[22].mxu0 }
 0x382   :  { %542 = vst.msk [vmem:[%s879_s9 + $0x30] sm:$0xff] %vm535_vm2, %v529_v61  ;;  %v532_v1 = vadd.f32 %v675_v0, %v573_v51  ;;  %v523_v2 = vpop.f32.mrb[23].mxu0 }
 0x383   :  { %540 = vst.msk [vmem:[%s879_s9 + $0x20] sm:$0xff] %vm535_vm2, %v521_v63  ;;  %v524_v3 = vadd.f32 %v573_v51, %v523_v2 }
 0x384   :  { %543 = vst.msk [vmem:[%s879_s9 + $0x38] sm:$0xff] %vm535_vm2, %v532_v1 }
 0x385   :  { %541 = vst.msk [vmem:[%s879_s9 + $0x28] sm:$0xff] %vm535_vm2, %v524_v3 }

</bundles_post_ra>
